<compile_context>
chip_gen: v5e
topology: v5e:2x2
jax: 0.10.0
libtpu: 0.0.40
codegen_flags: <defaults>
</compile_context>

<pallas_src>
import jax
import jax.numpy as jnp
from jax.experimental import pallas as pl
from jax.experimental.pallas import tpu as pltpu

_LANE = 128
_SUBLANE = 8


def _round_up(n, m):
    return m * pl.cdiv(n, m)


# ---------------------------------------------------------------------------
# Kernel factory: closes over the static slab layout constants.
# ---------------------------------------------------------------------------
def _make_kernel(fp, sw, act_dim):
    def kernel(x_ref, w_ref, b_ref, out_ref):
        b = b_ref[...]                       # (8, SW); rows 0..4 used
        h = x_ref[...]                       # (Bt, Fp)

        # Fused layer 1: [policy | value] trunks side by side, lane-dense.
        h = jnp.dot(h, w_ref[0:fp, :],
                    preferred_element_type=jnp.float32) + b[0:1, :]
        h = jnp.maximum(h, 0.0)

        # Fused layers 2..4: block-diagonal weights -> one dot + ReLU each.
        for l in range(3):
            r0 = fp + l * sw
            h = jnp.dot(h, w_ref[r0:r0 + sw, :],
                        preferred_element_type=jnp.float32) + b[l + 1:l + 2, :]
            h = jnp.maximum(h, 0.0)

        # Fused head: one dot -> columns [p_out | sig_pre | v_out | zeros].
        r0 = fp + 3 * sw
        o = jnp.dot(h, w_ref[r0:r0 + sw, :],
                    preferred_element_type=jnp.float32) + b[4:5, :]

        lane = jax.lax.broadcasted_iota(jnp.int32, o.shape, dimension=1)
        is_sig = (lane >= act_dim) & (lane < 2 * act_dim)
        # numerically stable softplus: max(x, 0) + log(1 + exp(-|x|))
        softplus = jnp.maximum(o, 0.0) + jnp.log(1.0 + jnp.exp(-jnp.abs(o)))
        out_ref[...] = jnp.where(is_sig, softplus, o).astype(out_ref.dtype)

    return kernel


# ---------------------------------------------------------------------------
# Pack all 22 parameter tensors into two VMEM-resident slabs.
#   weight slab rows: [W1 (Fp) | W2 (SW) | W3 (SW) | W4 (SW) | Whead (SW)]
#   bias slab:        (8, SW) with rows 0..3 = layer biases, row 4 = head bias
# ---------------------------------------------------------------------------
def _build_slabs(params, feat):
    H = params["p"][0][0].shape[1]
    A = params["policy"][0].shape[1]
    fp = _round_up(feat, _SUBLANE)
    sw = max(_round_up(2 * H, _LANE), _round_up(2 * A + 1, _LANE))

    w_slab = jnp.zeros((fp + 4 * sw, sw), jnp.float32)
    b_slab = jnp.zeros((_SUBLANE, sw), jnp.float32)

    # layer 1: horizontal concat (shared input x)
    pw1, pb1 = params["p"][0]
    vw1, vb1 = params["v"][0]
    w_slab = w_slab.at[:feat, :H].set(pw1).at[:feat, H:2 * H].set(vw1)
    b_slab = b_slab.at[0, :H].set(pb1[0]).at[0, H:2 * H].set(vb1[0])

    # layers 2..4: block-diagonal
    for l in range(1, 4):
        pw, pb = params["p"][l]
        vw, vb = params["v"][l]
        r0 = fp + (l - 1) * sw
        w_slab = (w_slab.at[r0:r0 + H, :H].set(pw)
                        .at[r0 + H:r0 + 2 * H, H:2 * H].set(vw))
        b_slab = b_slab.at[l, :H].set(pb[0]).at[l, H:2 * H].set(vb[0])

    # fused head: columns [0:A]=policy_5, [A:2A]=policy_sig, [2A]=value_5
    wp, bp = params["policy"]
    ws, bs = params["policy_sig"]
    wv, bv = params["value"]
    r0 = fp + 3 * sw
    w_slab = (w_slab.at[r0:r0 + H, :A].set(wp)
                    .at[r0:r0 + H, A:2 * A].set(ws)
                    .at[r0 + H:r0 + 2 * H, 2 * A:2 * A + 1].set(wv))
    b_slab = (b_slab.at[4, :A].set(bp[0])
                    .at[4, A:2 * A].set(bs[0])
                    .at[4, 2 * A:2 * A + 1].set(bv[0]))
    return w_slab, b_slab, fp, sw, A


# ---------------------------------------------------------------------------
# Wrapper: batch tiling, padding, pallas_call plumbing.
# ---------------------------------------------------------------------------
def a3c_mlp_con_forward(x, params, *, batch_tile=512):
    """x: (B, hist_len, state_shape) -> (p_out (B,A), sig (B,A), v_out (B,1))."""
    B = x.shape[0]
    x2d = x.reshape(B, -1).astype(jnp.float32)        # x.view(B, hist*state)
    F = x2d.shape[1]

    w_slab, b_slab, fp, sw, A = _build_slabs(params, F)
    if fp != F:
        x2d = jnp.pad(x2d, ((0, 0), (0, fp - F)))

    # Batch tile: 8-sublane aligned, capped so the grid has >= 2 steps when
    # the batch allows it (v7x megacore sharding of the "parallel" axis).
    bt = _round_up(batch_tile, _SUBLANE)
    two_step_cap = _round_up(pl.cdiv(B, 2), _SUBLANE)
    bt = min(bt, max(two_step_cap, _SUBLANE))
    b_pad = _round_up(B, bt)
    if b_pad != B:
        x2d = jnp.pad(x2d, ((0, b_pad - B), (0, 0)))

    grid = (b_pad // bt,)
    kernel = _make_kernel(fp, sw, A)

    flops = 2 * b_pad * (fp * sw + 4 * sw * sw)
    bytes_accessed = 4 * (int(x2d.size) + int(w_slab.size) + int(b_slab.size)
                          + b_pad * sw)
    cost = pl.CostEstimate(flops=int(flops),
                           transcendentals=int(2 * b_pad * sw),
                           bytes_accessed=int(bytes_accessed))

    out = pl.pallas_call(
        kernel,
        grid=grid,
        out_shape=jax.ShapeDtypeStruct((b_pad, sw), jnp.float32),
        in_specs=[
            pl.BlockSpec((bt, fp), lambda i: (i, 0)),
            # Weight / bias slabs: constant block index -> DMA'd once,
            # VMEM-resident across the whole batch grid.
            pl.BlockSpec(w_slab.shape, lambda i: (0, 0)),
            pl.BlockSpec(b_slab.shape, lambda i: (0, 0)),
        ],
        out_specs=pl.BlockSpec((bt, sw), lambda i: (i, 0)),
        compiler_params=pltpu.CompilerParams(
            dimension_semantics=("parallel",)),
        cost_estimate=cost,
    )(x2d, w_slab, b_slab)

    p_out = out[:B, :A]
    sig = out[:B, A:2 * A]
    v_out = out[:B, 2 * A:2 * A + 1]
    return p_out, sig, v_out


# ---------------------------------------------------------------------------
# Deterministic parameter construction (shapes mirror the PyTorch module;
# weights stored pre-transposed as (in, out), biases as (1, out)).
# ---------------------------------------------------------------------------
def init_params(key, in_dim, hidden_dim, action_dim):
    def linear(k, fan_in, fan_out):
        kw, kb = jax.random.split(k)
        bound = 1.0 / (fan_in ** 0.5)
        w = jax.random.uniform(kw, (fan_in, fan_out), jnp.float32, -bound, bound)
        b = jax.random.uniform(kb, (1, fan_out), jnp.float32, -bound, bound)
        return w, b

    keys = jax.random.split(key, 11)
    p_layers = [linear(keys[0], in_dim, hidden_dim),
                linear(keys[1], hidden_dim, hidden_dim),
                linear(keys[2], hidden_dim, hidden_dim),
                linear(keys[3], hidden_dim, hidden_dim)]
    v_layers = [linear(keys[4], in_dim, hidden_dim),
                linear(keys[5], hidden_dim, hidden_dim),
                linear(keys[6], hidden_dim, hidden_dim),
                linear(keys[7], hidden_dim, hidden_dim)]
    return {
        "p": p_layers,
        "v": v_layers,
        "policy": linear(keys[8], hidden_dim, action_dim),
        "policy_sig": linear(keys[9], hidden_dim, action_dim),
        "value": linear(keys[10], hidden_dim, 1),
    }


def _reference_forward(x, params):
    """Pure-JAX reference of A3CMlpConModel.forward (enable_lstm=False)."""
    hi = jax.lax.Precision.HIGHEST
    h = x.reshape(x.shape[0], -1).astype(jnp.float32)

    def trunk(h0, layers):
        h1 = h0
        for w, b in layers:
            h1 = jnp.maximum(jnp.dot(h1, w, precision=hi) + b, 0.0)
        return h1

    p = trunk(h, params["p"])
    v = trunk(h, params["v"])
    wp, bp = params["policy"]
    ws, bs = params["policy_sig"]
    wv, bv = params["value"]
    p_out = jnp.dot(p, wp, precision=hi) + bp
    sig = jax.nn.softplus(jnp.dot(p, ws, precision=hi) + bs)
    v_out = jnp.dot(v, wv, precision=hi) + bv
    return p_out, sig, v_out


if __name__ == "__main__":
    # args: hist_len=4, state_shape=16, hidden_dim=32, action_dim=4, batch=2
    B, HIST, STATE, HID, ACT = 2, 4, 16, 32, 4

    key = jax.random.PRNGKey(0)
    kx, kp, kx2 = jax.random.split(key, 3)

    params = init_params(kp, HIST * STATE, HID, ACT)

    TOL = 2e-3

    # --- tiny batch (single grid step; batch padded up to 8 sublanes) ------
    x = jax.random.normal(kx, (B, HIST, STATE), dtype=jnp.float32)
    p_out, sig, v_out = a3c_mlp_con_forward(x, params)
    jax.block_until_ready((p_out, sig, v_out))
    p_ref, s_ref, v_ref = _reference_forward(x, params)
    assert p_out.shape == (B, ACT) and sig.shape == (B, ACT) and v_out.shape == (B, 1)
    assert jnp.allclose(p_out, p_ref, atol=TOL, rtol=TOL)
    assert jnp.allclose(sig, s_ref, atol=TOL, rtol=TOL)
    assert jnp.allclose(v_out, v_ref, atol=TOL, rtol=TOL)
    assert bool(jnp.all(sig >= 0.0))            # softplus output is positive

    # --- larger ragged batch (exercises multi-step batch grid + padding) ---
    B2 = 300
    x2 = jax.random.normal(kx2, (B2, HIST, STATE), dtype=jnp.float32)
    p2, s2, v2 = a3c_mlp_con_forward(x2, params, batch_tile=128)
    jax.block_until_ready((p2, s2, v2))
    p2r, s2r, v2r = _reference_forward(x2, params)
    assert p2.shape == (B2, ACT) and s2.shape == (B2, ACT) and v2.shape == (B2, 1)
    assert jnp.allclose(p2, p2r, atol=TOL, rtol=TOL)
    assert jnp.allclose(s2, s2r, atol=TOL, rtol=TOL)
    assert jnp.allclose(v2, v2r, atol=TOL, rtol=TOL)

    print("KERNEL_OK")
</pallas_src>

<mosaic_0001>
module attributes {stable_mosaic.version = 11 : i64} {
  func.func @kernel(%arg0: i32, %arg1: memref<8x64xf32, #tpu.memory_space<vmem>>, %arg2: memref<576x128xf32, #tpu.memory_space<vmem>>, %arg3: memref<8x128xf32, #tpu.memory_space<vmem>>, %arg4: memref<8x128xf32, #tpu.memory_space<vmem>>) attributes {dimension_semantics = [#tpu.dimension_semantics<parallel>], iteration_bounds = array<i64: 1>, scalar_prefetch = 0 : i64, scratch_operands = 0 : i64, tpu.core_type = #tpu.core_type<tc>, window_params = [{transform_indices = @transform_0, window_bounds = array<i64: 8, 64>}, {pipeline_mode = #tpu.pipeline_mode<synchronous>, transform_indices = @transform_1, window_bounds = array<i64: 576, 128>}, {pipeline_mode = #tpu.pipeline_mode<synchronous>, transform_indices = @transform_2, window_bounds = array<i64: 8, 128>}, {transform_indices = @transform_3, window_bounds = array<i64: 8, 128>}]} {
    %c0 = arith.constant 0 : index
    %c0_0 = arith.constant 0 : index
    %0 = vector.load %arg3[%c0, %c0_0] : memref<8x128xf32, #tpu.memory_space<vmem>>, vector<8x128xf32>
    %c0_1 = arith.constant 0 : index
    %c0_2 = arith.constant 0 : index
    %1 = vector.load %arg1[%c0_1, %c0_2] : memref<8x64xf32, #tpu.memory_space<vmem>>, vector<8x64xf32>
    %c0_3 = arith.constant 0 : index
    %c0_4 = arith.constant 0 : index
    %2 = vector.load %arg2[%c0_3, %c0_4] : memref<576x128xf32, #tpu.memory_space<vmem>>, vector<64x128xf32>
    %cst = arith.constant dense<0.000000e+00> : vector<8x128xf32>
    %3 = tpu.matmul %1, %2, %cst {dimension_numbers = #tpu.dot_dimension_numbers<[1], [0], [0], [1], [0, 0, 1, 1], [], []>} : vector<8x64xf32>, vector<64x128xf32>, vector<8x128xf32> -> vector<8x128xf32>
    %4 = vector.extract_strided_slice %0 {offsets = [0, 0], sizes = [1, 128], strides = [1, 1]} : vector<8x128xf32> to vector<1x128xf32>
    %5 = vector.broadcast %4 : vector<1x128xf32> to vector<8x128xf32>
    %6 = arith.addf %3, %5 : vector<8x128xf32>
    %cst_5 = arith.constant 0.000000e+00 : f32
    %7 = vector.broadcast %cst_5 : f32 to vector<8x128xf32>
    %8 = arith.maximumf %6, %7 : vector<8x128xf32>
    %c64 = arith.constant 64 : index
    %c0_6 = arith.constant 0 : index
    %9 = vector.load %arg2[%c64, %c0_6] : memref<576x128xf32, #tpu.memory_space<vmem>>, vector<128x128xf32>
    %cst_7 = arith.constant dense<0.000000e+00> : vector<8x128xf32>
    %10 = tpu.matmul %8, %9, %cst_7 {dimension_numbers = #tpu.dot_dimension_numbers<[1], [0], [0], [1], [0, 0, 1, 1], [], []>} : vector<8x128xf32>, vector<128x128xf32>, vector<8x128xf32> -> vector<8x128xf32>
    %11 = vector.extract_strided_slice %0 {offsets = [1, 0], sizes = [1, 128], strides = [1, 1]} : vector<8x128xf32> to vector<1x128xf32>
    %12 = vector.broadcast %11 : vector<1x128xf32> to vector<8x128xf32>
    %13 = arith.addf %10, %12 : vector<8x128xf32>
    %cst_8 = arith.constant 0.000000e+00 : f32
    %14 = vector.broadcast %cst_8 : f32 to vector<8x128xf32>
    %15 = arith.maximumf %13, %14 : vector<8x128xf32>
    %c192 = arith.constant 192 : index
    %c0_9 = arith.constant 0 : index
    %16 = vector.load %arg2[%c192, %c0_9] : memref<576x128xf32, #tpu.memory_space<vmem>>, vector<128x128xf32>
    %cst_10 = arith.constant dense<0.000000e+00> : vector<8x128xf32>
    %17 = tpu.matmul %15, %16, %cst_10 {dimension_numbers = #tpu.dot_dimension_numbers<[1], [0], [0], [1], [0, 0, 1, 1], [], []>} : vector<8x128xf32>, vector<128x128xf32>, vector<8x128xf32> -> vector<8x128xf32>
    %18 = vector.extract_strided_slice %0 {offsets = [2, 0], sizes = [1, 128], strides = [1, 1]} : vector<8x128xf32> to vector<1x128xf32>
    %19 = vector.broadcast %18 : vector<1x128xf32> to vector<8x128xf32>
    %20 = arith.addf %17, %19 : vector<8x128xf32>
    %cst_11 = arith.constant 0.000000e+00 : f32
    %21 = vector.broadcast %cst_11 : f32 to vector<8x128xf32>
    %22 = arith.maximumf %20, %21 : vector<8x128xf32>
    %c320 = arith.constant 320 : index
    %c0_12 = arith.constant 0 : index
    %23 = vector.load %arg2[%c320, %c0_12] : memref<576x128xf32, #tpu.memory_space<vmem>>, vector<128x128xf32>
    %cst_13 = arith.constant dense<0.000000e+00> : vector<8x128xf32>
    %24 = tpu.matmul %22, %23, %cst_13 {dimension_numbers = #tpu.dot_dimension_numbers<[1], [0], [0], [1], [0, 0, 1, 1], [], []>} : vector<8x128xf32>, vector<128x128xf32>, vector<8x128xf32> -> vector<8x128xf32>
    %25 = vector.extract_strided_slice %0 {offsets = [3, 0], sizes = [1, 128], strides = [1, 1]} : vector<8x128xf32> to vector<1x128xf32>
    %26 = vector.broadcast %25 : vector<1x128xf32> to vector<8x128xf32>
    %27 = arith.addf %24, %26 : vector<8x128xf32>
    %cst_14 = arith.constant 0.000000e+00 : f32
    %28 = vector.broadcast %cst_14 : f32 to vector<8x128xf32>
    %29 = arith.maximumf %27, %28 : vector<8x128xf32>
    %c448 = arith.constant 448 : index
    %c0_15 = arith.constant 0 : index
    %30 = vector.load %arg2[%c448, %c0_15] : memref<576x128xf32, #tpu.memory_space<vmem>>, vector<128x128xf32>
    %cst_16 = arith.constant dense<0.000000e+00> : vector<8x128xf32>
    %31 = tpu.matmul %29, %30, %cst_16 {dimension_numbers = #tpu.dot_dimension_numbers<[1], [0], [0], [1], [0, 0, 1, 1], [], []>} : vector<8x128xf32>, vector<128x128xf32>, vector<8x128xf32> -> vector<8x128xf32>
    %32 = vector.extract_strided_slice %0 {offsets = [4, 0], sizes = [1, 128], strides = [1, 1]} : vector<8x128xf32> to vector<1x128xf32>
    %33 = vector.broadcast %32 : vector<1x128xf32> to vector<8x128xf32>
    %34 = arith.addf %31, %33 : vector<8x128xf32>
    %35 = tpu.iota {dimensions = array<i32: 1>} : vector<8x128xi32>
    %c4_i32 = arith.constant 4 : i32
    %36 = vector.broadcast %c4_i32 : i32 to vector<8x128xi32>
    %37 = arith.cmpi sge, %35, %36 : vector<8x128xi32>
    %c8_i32 = arith.constant 8 : i32
    %38 = vector.broadcast %c8_i32 : i32 to vector<8x128xi32>
    %39 = arith.cmpi slt, %35, %38 : vector<8x128xi32>
    %40 = arith.andi %37, %39 : vector<8x128xi1>
    %cst_17 = arith.constant 0.000000e+00 : f32
    %41 = vector.broadcast %cst_17 : f32 to vector<8x128xf32>
    %42 = arith.maximumf %34, %41 : vector<8x128xf32>
    %43 = math.absf %34 : vector<8x128xf32>
    %cst_18 = arith.constant 0.000000e+00 : f32
    %44 = vector.broadcast %cst_18 : f32 to vector<8x128xf32>
    %45 = arith.subf %44, %43 : vector<8x128xf32>
    %46 = math.exp %45 : vector<8x128xf32>
    %cst_19 = arith.constant 1.000000e+00 : f32
    %47 = vector.broadcast %cst_19 : f32 to vector<8x128xf32>
    %48 = arith.addf %47, %46 : vector<8x128xf32>
    %49 = math.log %48 : vector<8x128xf32>
    %50 = arith.addf %42, %49 : vector<8x128xf32>
    %51 = arith.select %40, %50, %34 : vector<8x128xi1>, vector<8x128xf32>
    %c0_20 = arith.constant 0 : index
    %c0_21 = arith.constant 0 : index
    %52 = vector.load %arg4[%c0_20, %c0_21] : memref<8x128xf32, #tpu.memory_space<vmem>>, vector<8x128xf32>
    tpu.vector_store %arg4[%c0_20, %c0_21], %51 {strides = array<i32>} : memref<8x128xf32, #tpu.memory_space<vmem>>, vector<8x128xf32>,
    return
  }
  func.func @transform_0(%arg0: i32) -> (i32, i32) {
    %c0_i32 = arith.constant 0 : i32
    %c0_i32_0 = arith.constant 0 : i32
    return %arg0, %c0_i32 : i32, i32
  }
  func.func @transform_1(%arg0: i32) -> (i32, i32) {
    %c0_i32 = arith.constant 0 : i32
    %c0_i32_0 = arith.constant 0 : i32
    %c0_i32_1 = arith.constant 0 : i32
    return %c0_i32, %c0_i32_0 : i32, i32
  }
  func.func @transform_2(%arg0: i32) -> (i32, i32) {
    %c0_i32 = arith.constant 0 : i32
    %c0_i32_0 = arith.constant 0 : i32
    %c0_i32_1 = arith.constant 0 : i32
    return %c0_i32, %c0_i32_0 : i32, i32
  }
  func.func @transform_3(%arg0: i32) -> (i32, i32) {
    %c0_i32 = arith.constant 0 : i32
    %c0_i32_0 = arith.constant 0 : i32
    return %arg0, %c0_i32 : i32, i32
  }
}

</mosaic_0001>

<bundles_post_ra>
// kernel: tpu_custom_call.1
= control target key start
LH: loop header
LB: loop body
LE: loop exit
PB: predicated region body
PF: predicated region fallthrough
CT: control target
= control target key end

     0   :  { %8 = vsyncpa [#allocation3], 0  ;;  %s437_s0 = inlined_call_operand.hbm [shape: f32[8,64], index: 0, kind: input, shape index: {}]   ;;  %s438_s1 = inlined_call_operand.hbm [shape: f32[576,128], index: 1, kind: input, shape index: {}]   ;;  %s439_s2 = inlined_call_operand.hbm [shape: f32[8,128], index: 2, kind: input, shape index: {}]   ;;  %s440_s3 = inlined_call_operand.hbm [shape: f32[8,128], index: 3, kind: output, shape index: {}]  }
   0x1   :  { %9 = vsyncpa [#allocation6], 0  ;;  %s26_s14 = sshll.u32 %s438_s1, 4  ;;  %s27_s14 = int_to_ptr.hbm [resolvable:$true] %s26_s14 }
   0x2   :  { %10 = vsyncpa [#allocation4], 0  ;;  %s392_s15 = smov [#allocation5]   ;;  %s16_s19 = sshll.u32 %s437_s0, 4  ;;  %s17_s19 = int_to_ptr.hbm [resolvable:$true] %s16_s19 }
   0x3   :  { %s28_s16 = sshll.u32 %s392_s15, 4  ;;  %s393_s20 = smov 128   ;;  %s29_s16 = int_to_ptr.vmem [resolvable:$true] %s28_s16 }
   0x4   :  { %s394_s21 = smov 8   ;;  %s395_s22 = smov [#allocation2]  }
   0x5   :  { %34 = dma.hbm_to_vmem [thread:$0]  %s27_s14, 9216, %s29_s16, [#allocation6], %s393_s20, %s393_s20, %s394_s21  }
   0x6   :  { %s18_s23 = sshll.u32 %s395_s22, 4  ;;  %s40_s26 = sshll.u32 %s439_s2, 4  ;;  %s19_s23 = int_to_ptr.vmem [resolvable:$true] %s18_s23  ;;  %s41_s26 = int_to_ptr.hbm [resolvable:$true] %s40_s26 }
   0x7   :  { %21 = dma.hbm_to_vmem [thread:$0]  %s17_s19, 128, %s19_s23, [#allocation3]  }
   0x8   :  { %s396_s1 = smov [#allocation7]  }
   0x9   :  { %s42_s27 = sshll.u32 %s396_s1, 4  ;;  %s43_s27 = int_to_ptr.vmem [resolvable:$true] %s42_s27 }
   0xa   :  { %45 = dma.hbm_to_vmem [thread:$0]  %s41_s26, 128, %s43_s27, [#allocation6]  }
   0xb   :  { %386 = dma.done.wait [#allocation3], 128  }
   0xc   :  { %387 = vsyncadd [#allocation3], 4294967168 }
   0xd   :  { %388 = dma.done.wait [#allocation6], 9344  }
   0xe   :  { %389 = vsyncadd [#allocation6], 4294957952  ;;  %v67_v0 = vld [vmem:[#allocation5 + $0x38] sm:$0xff]  ;;  %v66_v1 = vld [vmem:[#allocation5 + $0x30] sm:$0xff]  ;;  %vm69_vm0 = vcmask 523264   ;;  %s397_s0 = smov [#allocation8]  }
   0xf   :  { %81 = vmatpush.msra.mxu0 %v67_v0  ;;  %v65_v2 = vld [vmem:[#allocation5 + $0x28] sm:$0xff]  ;;  %v109_v3 = vld [vmem:[#allocation5 + $0xb8] sm:$0xff]  ;;  %v108_v4 = vld [vmem:[#allocation5 + $0xb0] sm:$0xff]  ;;  %s266_s2 = sshll.u32 %s397_s0, 4  ;;  %s268_s30 = sshll.u32 %s440_s3, 4  ;;  %s267_s2 = int_to_ptr.vmem [resolvable:$true] %s266_s2  ;;  %s269_s30 = int_to_ptr.hbm [resolvable:$true] %s268_s30 }
  0x10   :  { %v64_v5 = vld [vmem:[#allocation5 + $0x20] sm:$0xff]  ;;  %111 = vmatpush.msra.mxu1 %v109_v3  ;;  %v107_v6 = vld [vmem:[#allocation5 + $0xa8] sm:$0xff]  ;;  %v63_v7 = vld [vmem:[#allocation5 + $0x18] sm:$0xff] }
  0x11   :  { %82 = vmatpush.msra.mxu0 %v66_v1  ;;  %v106_v8 = vld [vmem:[#allocation5 + $0xa0] sm:$0xff]  ;;  %v62_v9 = vld [vmem:[#allocation5 + $0x10] sm:$0xff]  ;;  %v105_v10 = vld [vmem:[#allocation5 + $0x98] sm:$0xff] }
  0x12   :  { %112 = vmatpush.msra.mxu1 %v108_v4  ;;  %v61_v11 = vld [vmem:[#allocation5 + $0x8] sm:$0xff]  ;;  %v104_v12 = vld [vmem:[#allocation5 + $0x90] sm:$0xff]  ;;  %v60_v13 = vld [vmem:[#allocation5] sm:$0xff] }
  0x13   :  { %83 = vmatpush.msra.mxu0 %v65_v2  ;;  %v59_v14 = vld [vmem:[#allocation2] sm:$0xff]  ;;  %v103_v15 = vld [vmem:[#allocation5 + $0x88] sm:$0xff]  ;;  %v102_v16 = vld [vmem:[#allocation5 + $0x80] sm:$0xff] }
  0x14   :  { %113 = vmatpush.msra.mxu1 %v107_v6  ;;  %v101_v17 = vld [vmem:[#allocation5 + $0x78] sm:$0xff]  ;;  %v100_v18 = vld [vmem:[#allocation5 + $0x70] sm:$0xff]  ;;  %v99_v19 = vld [vmem:[#allocation5 + $0x68] sm:$0xff] }
  0x15   :  { %84 = vmatpush.msra.mxu0 %v64_v5  ;;  %v98_v20 = vld [vmem:[#allocation5 + $0x60] sm:$0xff]  ;;  %v97_v21 = vld [vmem:[#allocation5 + $0x58] sm:$0xff]  ;;  %v96_v22 = vld [vmem:[#allocation5 + $0x50] sm:$0xff] }
  0x16   :  { %114 = vmatpush.msra.mxu1 %v106_v8  ;;  %v95_v23 = vld [vmem:[#allocation5 + $0x48] sm:$0xff]  ;;  %v94_v24 = vld [vmem:[#allocation5 + $0x40] sm:$0xff]  ;;  %v147_v25 = vld [vmem:[#allocation5 + $0x138] sm:$0xff] }
  0x17   :  { %85 = vmatpush.msra.mxu0 %v63_v7  ;;  %v146_v26 = vld [vmem:[#allocation5 + $0x130] sm:$0xff]  ;;  %149 = vmatpush.msra.mxu2 %v147_v25  ;;  %v145_v27 = vld [vmem:[#allocation5 + $0x128] sm:$0xff]  ;;  %v144_v28 = vld [vmem:[#allocation5 + $0x120] sm:$0xff] }
  0x18   :  { %115 = vmatpush.msra.mxu1 %v105_v10  ;;  %v143_v29 = vld [vmem:[#allocation5 + $0x118] sm:$0xff]  ;;  %v142_v30 = vld [vmem:[#allocation5 + $0x110] sm:$0xff]  ;;  %v141_v31 = vld [vmem:[#allocation5 + $0x108] sm:$0xff] }
  0x19   :  { %86 = vmatpush.msra.mxu0 %v62_v9  ;;  %150 = vmatpush.msra.mxu2 %v146_v26  ;;  %v140_v32 = vld [vmem:[#allocation5 + $0x100] sm:$0xff]  ;;  %v139_v33 = vld [vmem:[#allocation5 + $0xf8] sm:$0xff]  ;;  %v138_v34 = vld [vmem:[#allocation5 + $0xf0] sm:$0xff] }
  0x1a   :  { %116 = vmatpush.msra.mxu1 %v104_v12  ;;  %v137_v35 = vld [vmem:[#allocation5 + $0xe8] sm:$0xff]  ;;  %v136_v36 = vld [vmem:[#allocation5 + $0xe0] sm:$0xff]  ;;  %v135_v38 = vld [vmem:[#allocation5 + $0xd8] sm:$0xff] }
  0x1b   :  { %87 = vmatpush.msra.mxu0 %v61_v11  ;;  %151 = vmatpush.msra.mxu2 %v145_v27  ;;  %v427_v37 = vld [vmem:[#allocation7] sm:$0xff]  ;;  %v134_v43 = vld [vmem:[#allocation5 + $0xd0] sm:$0xff]  ;;  %v133_v44 = vld [vmem:[#allocation5 + $0xc8] sm:$0xff] }
  0x1c   :  { %117 = vmatpush.msra.mxu1 %v103_v15  ;;  %v68_v39 = vperm.slane %v427_v37, 0  ;;  %v132_v45 = vld [vmem:[#allocation5 + $0xc0] sm:$0xff]  ;;  %v185_v46 = vld [vmem:[#allocation5 + $0x1b8] sm:$0xff]  ;;  %v184_v47 = vld [vmem:[#allocation5 + $0x1b0] sm:$0xff]  ;;  %v110_v59 = vperm.slane %v427_v37, 1  ;;  %v148_v15 = vperm.slane %v427_v37, 2 }
  0x1d   :  { %88 = vmatpush.msra.mxu0 %v60_v13  ;;  %152 = vmatpush.msra.mxu2 %v144_v28  ;;  %v183_v48 = vld [vmem:[#allocation5 + $0x1a8] sm:$0xff]  ;;  %v182_v49 = vld [vmem:[#allocation5 + $0x1a0] sm:$0xff]  ;;  %v181_v50 = vld [vmem:[#allocation5 + $0x198] sm:$0xff]  ;;  %v224_v26 = vperm.slane %v427_v37, 4 }
  0x1e   :  { %279 = vmatmul.msk.f32.vlgmr.msra.gmra.mxu0 %vm69_vm0, %v59_v14  ;;  %118 = vmatpush.msra.mxu1 %v102_v16  ;;  %v180_v51 = vld [vmem:[#allocation5 + $0x190] sm:$0xff]  ;;  %v179_v52 = vld [vmem:[#allocation5 + $0x188] sm:$0xff]  ;;  %v178_v53 = vld [vmem:[#allocation5 + $0x180] sm:$0xff] }
  0x1f   :  { %153 = vmatpush.msra.mxu2 %v143_v29  ;;  %187 = vmatpush.msra.mxu3 %v185_v46  ;;  %v177_v54 = vld [vmem:[#allocation5 + $0x178] sm:$0xff]  ;;  %v176_v55 = vld [vmem:[#allocation5 + $0x170] sm:$0xff]  ;;  %v175_v56 = vld [vmem:[#allocation5 + $0x168] sm:$0xff] }
  0x20   :  { %119 = vmatpush.msra.mxu1 %v101_v17  ;;  %v174_v57 = vld [vmem:[#allocation5 + $0x160] sm:$0xff]  ;;  %v173_v58 = vld [vmem:[#allocation5 + $0x158] sm:$0xff]  ;;  %v172_v63 = vld [vmem:[#allocation5 + $0x150] sm:$0xff] }
  0x21   :  { %154 = vmatpush.msra.mxu2 %v142_v30  ;;  %188 = vmatpush.msra.mxu3 %v184_v47  ;;  %v171_v0 = vld [vmem:[#allocation5 + $0x148] sm:$0xff]  ;;  %v170_v1 = vld [vmem:[#allocation5 + $0x140] sm:$0xff]  ;;  %v223_v2 = vld [vmem:[#allocation5 + $0x238] sm:$0xff] }
  0x22   :  { %120 = vmatpush.msra.mxu1 %v100_v18  ;;  %v222_v3 = vld [vmem:[#allocation5 + $0x230] sm:$0xff]  ;;  %225 = vmatpush.msrb.mxu0 %v223_v2  ;;  %v221_v4 = vld [vmem:[#allocation5 + $0x228] sm:$0xff]  ;;  %v220_v5 = vld [vmem:[#allocation5 + $0x220] sm:$0xff] }
  0x23   :  { %155 = vmatpush.msra.mxu2 %v141_v31  ;;  %189 = vmatpush.msra.mxu3 %v183_v48  ;;  %v219_v6 = vld [vmem:[#allocation5 + $0x218] sm:$0xff]  ;;  %v218_v7 = vld [vmem:[#allocation5 + $0x210] sm:$0xff]  ;;  %v217_v8 = vld [vmem:[#allocation5 + $0x208] sm:$0xff] }
  0x24   :  { %121 = vmatpush.msra.mxu1 %v99_v19  ;;  %226 = vmatpush.msrb.mxu0 %v222_v3  ;;  %v216_v9 = vld [vmem:[#allocation5 + $0x200] sm:$0xff]  ;;  %v215_v10 = vld [vmem:[#allocation5 + $0x1f8] sm:$0xff]  ;;  %v214_v11 = vld [vmem:[#allocation5 + $0x1f0] sm:$0xff] }
  0x25   :  { %156 = vmatpush.msra.mxu2 %v140_v32  ;;  %190 = vmatpush.msra.mxu3 %v182_v49  ;;  %v213_v12 = vld [vmem:[#allocation5 + $0x1e8] sm:$0xff]  ;;  %v212_v13 = vld [vmem:[#allocation5 + $0x1e0] sm:$0xff]  ;;  %v211_v14 = vld [vmem:[#allocation5 + $0x1d8] sm:$0xff] }
  0x26   :  { %122 = vmatpush.msra.mxu1 %v98_v20  ;;  %227 = vmatpush.msrb.mxu0 %v221_v4  ;;  %v210_v19 = vld [vmem:[#allocation5 + $0x1d0] sm:$0xff]  ;;  %v209_v20 = vld [vmem:[#allocation5 + $0x1c8] sm:$0xff] }
  0x27   :  { %157 = vmatpush.msra.mxu2 %v139_v33  ;;  %191 = vmatpush.msra.mxu3 %v181_v50  ;;  %v245_v33 = vlaneseq }
  0x28   :  { %123 = vmatpush.msra.mxu1 %v97_v21  ;;  %228 = vmatpush.msrb.mxu0 %v220_v5  ;;  %v208_v21 = vld [vmem:[#allocation5 + $0x1c0] sm:$0xff] }
  0x29   :  { %158 = vmatpush.msra.mxu2 %v138_v34  ;;  %192 = vmatpush.msra.mxu3 %v180_v51 }
  0x2a   :  { %124 = vmatpush.msra.mxu1 %v96_v22  ;;  %229 = vmatpush.msrb.mxu0 %v219_v6  ;;  %v186_v22 = vperm.slane %v427_v37, 3 }
  0x2b   :  { %159 = vmatpush.msra.mxu2 %v137_v35  ;;  %193 = vmatpush.msra.mxu3 %v179_v52  ;;  %v246_v35 = vand.u32 127, %v245_v33 }
  0x2c   :  { %125 = vmatpush.msra.mxu1 %v95_v23  ;;  %230 = vmatpush.msrb.mxu0 %v218_v7 }
  0x2d   :  { %160 = vmatpush.msra.mxu2 %v136_v36  ;;  %194 = vmatpush.msra.mxu3 %v178_v53  ;;  %vm247_vm1 = vcmp.ge.s32.totalorder %v246_v35, 4  ;;  %vm248_vm2 = vcmp.lt.s32.totalorder %v246_v35, 8 }
  0x2e   :  { %126 = vmatpush.msra.mxu1 %v94_v24  ;;  %231 = vmatpush.msrb.mxu0 %v217_v8  ;;  %vm249_vm3 = vmand %vm247_vm1, %vm248_vm2 }
  0x2f   :  { %161 = vmatpush.msra.mxu2 %v135_v38  ;;  %195 = vmatpush.msra.mxu3 %v177_v54 }
  0x30   :  { %232 = vmatpush.msrb.mxu0 %v216_v9 }
  0x31   :  { %162 = vmatpush.msra.mxu2 %v134_v43  ;;  %196 = vmatpush.msra.mxu3 %v176_v55 }
  0x32   :  { %233 = vmatpush.msrb.mxu0 %v215_v10 }
  0x33   :  { %163 = vmatpush.msra.mxu2 %v133_v44  ;;  %197 = vmatpush.msra.mxu3 %v175_v56 }
  0x34   :  { %234 = vmatpush.msrb.mxu0 %v214_v11 }
  0x35   :  { %164 = vmatpush.msra.mxu2 %v132_v45  ;;  %198 = vmatpush.msra.mxu3 %v174_v57 }
  0x36   :  { %235 = vmatpush.msrb.mxu0 %v213_v12 }
  0x37   :  { %199 = vmatpush.msra.mxu3 %v173_v58 }
  0x38   :  { %236 = vmatpush.msrb.mxu0 %v212_v13 }
  0x39   :  { %200 = vmatpush.msra.mxu3 %v172_v63 }
  0x3a   :  { %237 = vmatpush.msrb.mxu0 %v211_v14 }
  0x3b   :  { %201 = vmatpush.msra.mxu3 %v171_v0 }
  0x3c   :  { %238 = vmatpush.msrb.mxu0 %v210_v19 }
  0x3d   :  { %202 = vmatpush.msra.mxu3 %v170_v1 }
  0x3e   :  { %239 = vmatpush.msrb.mxu0 %v209_v20 }
  0x40   :  { %240 = vmatpush.msrb.mxu0 %v208_v21 }
  0x9b   :  { %v90_v40 = vpop.f32.mrf.mxu0 }
  0x9c   :  { %v91_v41 = vadd.f32 %v90_v40, %v68_v39 }
  0x9e   :  { %v93_v42 = vmax.f32 %v91_v41, 0.0 }
  0xa0   :  { %127 = vmatmul.f32.vlgmr.msra.gmra.mxu1 %v93_v42 }
 0x11d   :  { %v128_v60 = vpop.f32.mrf.mxu1 }
 0x11e   :  { %v129_v61 = vadd.f32 %v128_v60, %v110_v59 }
 0x120   :  { %v131_v62 = vmax.f32 %v129_v61, 0.0 }
 0x122   :  { %165 = vmatmul.f32.vlgmr.msra.gmra.mxu2 %v131_v62 }
 0x1a5   :  { %v166_v16 = vpop.f32.mrf.mxu2 }
 0x1a6   :  { %v167_v17 = vadd.f32 %v166_v16, %v148_v15 }
 0x1a8   :  { %v169_v18 = vmax.f32 %v167_v17, 0.0 }
 0x1aa   :  { %203 = vmatmul.f32.vlgmr.msra.gmra.mxu3 %v169_v18 }
 0x22d   :  { %v204_v23 = vpop.f32.mrf.mxu3 }
 0x22e   :  { %v205_v24 = vadd.f32 %v204_v23, %v186_v22 }
 0x230   :  { %v207_v25 = vmax.f32 %v205_v24, 0.0 }
 0x232   :  { %241 = vmatmul.f32.vlgmr.msrb.gmra.mxu0 %v207_v25 }
 0x2af   :  { %v242_v27 = vpop.f32.mrf.mxu0 }
 0x2b0   :  { %v243_v28 = vadd.f32 %v242_v27, %v224_v26 }
 0x2b2   :  { %v251_v29 = vand.u32 2147483647, %v243_v28  ;;  %v250_v38 = vmax.f32 %v243_v28, 0.0 }
 0x2b4   :  { %v252_v30 = vsub.f32 0.0, %v251_v29 }
 0x2b6   :  { %v253_v31 = vmul.f32 1.442695, %v252_v30 }
 0x2b8   :  { %286 = vpow2.f32 %v253_v31 }
 0x2be   :  { %v287_v32 = vpop.eup %286 }
 0x2bf   :  { %v255_v34 = vadd.f32 1.0, %v287_v32 }
 0x2c1   :  { %288 = vlog2.f32 %v255_v34 }
 0x2c7   :  { %v289_v36 = vpop.eup %288 }
 0x2c8   :  { %v257_v39 = vmul.f32 0.6931472, %v289_v36 }
 0x2ca   :  { %v258_v37 = vadd.f32 %v257_v39, %v250_v38 }
 0x2cc   :  { %v259_v40 = vsel %vm249_vm3, %v258_v37, %v243_v28 }
 0x2cd   :  { %260 = vst [vmem:[#allocation8] sm:$0xff] %v259_v40 }
 0x2ce   :  { %271 = dma.vmem_to_hbm [thread:$0]  %s267_s2, 128, %s269_s30, [#allocation4]  }
 0x2cf   :  { %390 = dma.done.wait [#allocation4], 128  }
 0x2d0   :  { %391 = vsyncadd [#allocation4], 4294967168 }
 0x2d1   :  { %276 = vsyncpa [#allocation3], 1 }
 0x2d2   :  { %277 = vsyncpa [#allocation6], 1 }
 0x2d3   :  { %278 = vsyncpa [#allocation4], 1 }

</bundles_post_ra>
